<compile_context>
chip_gen: v6e
topology: v6e:2x2x1
jax: 0.10.0
libtpu: 0.0.40
codegen_flags: <defaults>
</compile_context>

<pallas_src>
import numpy as np

import jax
import jax.numpy as jnp
from jax import lax
from jax.experimental import pallas as pl
from jax.experimental.pallas import tpu as pltpu


def _round_up(v, m):
    return ((v + m - 1) // m) * m


def _triangular_schedule(nb, n_chunks):
    """Assign the upper-triangle (j >= i) i-row block groups to `n_chunks`
    work-balanced chunks and emit per-chunk (bi, bj, valid) step tables,
    padded to a common length.  Dummy steps replicate the last real pair so
    the pipeline keeps already-resident blocks (no extra DMA) and are skipped
    via the `valid` flag."""
    chunks = [[] for _ in range(n_chunks)]
    loads = [0] * n_chunks
    for i in range(nb):                      # group i has (nb - i) pairs
        c = int(np.argmin(loads))
        chunks[c].append(i)
        loads[c] += nb - i
    pair_lists = []
    for rows in chunks:
        pairs = []
        for i in rows:
            pairs.extend((i, j) for j in range(i, nb))
        pair_lists.append(pairs)
    length = max(len(p) for p in pair_lists)
    bi = np.zeros((n_chunks, length), np.int32)
    bj = np.zeros((n_chunks, length), np.int32)
    val = np.zeros((n_chunks, length), np.int32)
    for c, pairs in enumerate(pair_lists):
        for p, (i, j) in enumerate(pairs):
            bi[c, p], bj[c, p], val[c, p] = i, j, 1
        li, lj = pairs[-1]
        for p in range(len(pairs), length):  # padding steps
            bi[c, p], bj[c, p], val[c, p] = li, lj, 0
    return bi, bj, val, length


def _make_kernel(nb, t, needs_mask, precision):
    nslab = t // 128

    def body(bi_tbl, bj_tbl, val_tbl, w1_ref, w2t_ref, ai_ref, aj_ref,
             vj_ref, vi_ref, out_ref, acc_ref):
        c = pl.program_id(0)
        p = pl.program_id(1)
        bi = bi_tbl[c, p]
        bj = bj_tbl[c, p]

        @pl.when(val_tbl[c, p] == 1)          # skip chunk-padding dummy steps
        def _():
            # Fused Gram difference on the MXU: W1 @ W2^T == X X^T - Z Z^T.
            # j-side operand arrives pre-transposed -> plain (t,K)@(K,t).
            g = jnp.dot(w1_ref[...], w2t_ref[...],
                        preferred_element_type=jnp.float32,
                        precision=precision)
            # diff = 0.5 * (dist_X - dist_Z): `a` was pre-halved in the
            # wrapper so no 2*g multiply is needed (host rescales the loss).
            diff = ai_ref[...] + aj_ref[...] - g
            if needs_mask:                     # trace-time flag
                diff = diff * vj_ref[...]      # zero padded columns
            dsq = diff * diff
            # Deferred reduction: fold the (t,t) tile into a (t,128) slab
            # with lane-aligned VPU adds only (no per-step XLU reduce).
            part = dsq[:, 0:128]
            for s in range(1, nslab):
                part = part + dsq[:, s * 128:(s + 1) * 128]

            is_diag = bi == bj                 # first step of this i group

            @pl.when(is_diag)
            def _():
                acc_ref[...] = 0.5 * part      # diagonal block counted once

            @pl.when(bi != bj)
            def _():
                acc_ref[...] = acc_ref[...] + part   # off-diag doubled on host

            @pl.when(bj == nb - 1)             # last step of this i group
            def _():
                acc = acc_ref[...]
                if needs_mask:
                    acc = acc * vi_ref[...]    # zero padded rows
                # (t,128) -> (8,128): vreg-aligned sublane-group adds (VPU),
                # once per i group; lane-dense output written exactly once.
                red = jnp.sum(acc.reshape(t // 8, 8, 128), axis=0)
                out_ref[...] = red.reshape(1, 8, 128)

    if needs_mask:
        def kernel(bi_tbl, bj_tbl, val_tbl, w1_ref, w2t_ref, ai_ref, aj_ref,
                   vj_ref, vi_ref, out_ref, acc_ref):
            body(bi_tbl, bj_tbl, val_tbl, w1_ref, w2t_ref, ai_ref, aj_ref,
                 vj_ref, vi_ref, out_ref, acc_ref)
    else:
        def kernel(bi_tbl, bj_tbl, val_tbl, w1_ref, w2t_ref, ai_ref, aj_ref,
                   out_ref, acc_ref):
            body(bi_tbl, bj_tbl, val_tbl, w1_ref, w2t_ref, ai_ref, aj_ref,
                 None, None, out_ref, acc_ref)
    return kernel


def local_relation_loss(x, z, *, tile=512, gram_dtype=jnp.bfloat16):
    """Scalar f32 LocalRelationLoss of X (n,Fx) and Z (n,Fz).

    tile: row-block size (multiple of 128).  512 is safe on v5e/v6e/v7x;
          1024 is recommended on v6e (128 MiB VMEM).
    gram_dtype: jnp.bfloat16 -> single-pass MXU Gram (fast);
                jnp.float32  -> precision=HIGHEST Gram (3-6x MXU, ~f32 exact).
    """
    assert tile % 128 == 0, "tile must be a multiple of 128"
    n, fx = x.shape
    nz, fz = z.shape
    assert nz == n, "X and Z must have the same number of samples"

    xf = x.astype(jnp.float32)
    zf = z.astype(jnp.float32)

    # Row-block size / padding (always a multiple of 128 -> lane-aligned slabs).
    t = min(tile, _round_up(n, 128))
    n_pad = _round_up(n, t)
    pad = n_pad - n
    needs_mask = pad != 0
    if pad:
        xf = jnp.pad(xf, ((0, pad), (0, 0)))
        zf = jnp.pad(zf, ((0, pad), (0, 0)))
    nb = n_pad // t
    k = fx + fz

    # Pre-halved fused row term a_i = 0.5*(||x_i||^2 - ||z_i||^2), f32, O(n*F).
    a = 0.5 * (jnp.sum(xf * xf, axis=1, keepdims=True)
               - jnp.sum(zf * zf, axis=1, keepdims=True))          # (n_pad, 1)
    a_row = a.reshape(1, n_pad)

    # Fused Gram operands; j-side stored pre-transposed (no in-kernel vxpose).
    use_bf16 = jnp.dtype(gram_dtype) == jnp.dtype(jnp.bfloat16)
    precision = None if use_bf16 else lax.Precision.HIGHEST
    w1 = jnp.concatenate([xf, zf], axis=1).astype(gram_dtype)       # (n_pad, k)
    w2t = jnp.concatenate([xf, -zf], axis=1).T.astype(gram_dtype)   # (k, n_pad)

    operands = [w1, w2t, a, a_row]
    in_specs = [
        pl.BlockSpec((t, k), lambda c, p, bi, bj, vt: (bi[c, p], 0)),
        pl.BlockSpec((k, t), lambda c, p, bi, bj, vt: (0, bj[c, p])),
        pl.BlockSpec((t, 1), lambda c, p, bi, bj, vt: (bi[c, p], 0)),
        pl.BlockSpec((1, t), lambda c, p, bi, bj, vt: (0, bj[c, p])),
    ]
    if needs_mask:
        v = (jnp.arange(n_pad) < n).astype(jnp.float32)
        operands += [v.reshape(1, n_pad), v.reshape(n_pad, 1)]
        in_specs += [
            pl.BlockSpec((1, t), lambda c, p, bi, bj, vt: (0, bj[c, p])),
            pl.BlockSpec((t, 1), lambda c, p, bi, bj, vt: (bi[c, p], 0)),
        ]

    # Triangular (j >= i) schedule, split over a parallel chunk axis so both
    # v7x TensorCores stay busy (each chunk owns whole i groups -> no output
    # write conflicts).
    n_chunks = min(2, nb)
    bi_np, bj_np, val_np, steps = _triangular_schedule(nb, n_chunks)

    n_pairs = nb * (nb + 1) // 2
    itemsize = jnp.dtype(gram_dtype).itemsize
    flops = int(n_pairs * (2 * t * t * k + 6 * t * t))
    bytes_accessed = int(n_pairs * (t * k * itemsize + 8 * t)       # j stream
                         + nb * (t * k * itemsize + 8 * t)          # i groups
                         + nb * 8 * 128 * 4)
    cost = pl.CostEstimate(flops=flops, transcendentals=0,
                           bytes_accessed=bytes_accessed)

    compiler_params = pltpu.CompilerParams(
        dimension_semantics=("parallel", "arbitrary"),
        # (t,t) f32 intermediates grow quadratically; keep headroom below
        # v7x's 64 MiB VMEM when using large tiles.
        vmem_limit_bytes=(48 * 1024 * 1024 if t >= 1024 else None),
    )

    partials = pl.pallas_call(
        _make_kernel(nb, t, needs_mask, precision),
        out_shape=jax.ShapeDtypeStruct((nb, 8, 128), jnp.float32),
        grid_spec=pltpu.PrefetchScalarGridSpec(
            num_scalar_prefetch=3,
            grid=(n_chunks, steps),
            in_specs=in_specs,
            out_specs=pl.BlockSpec(
                (1, 8, 128), lambda c, p, bi, bj, vt: (bi[c, p], 0, 0)),
            scratch_shapes=[pltpu.VMEM((t, 128), jnp.float32)],
        ),
        compiler_params=compiler_params,
        cost_estimate=cost,
    )(jnp.asarray(bi_np), jnp.asarray(bj_np), jnp.asarray(val_np), *operands)

    # Host epilogue: factor 4 from the pre-halved `a` (diff was halved, so
    # dsq was quartered) and factor 2 from the triangular schedule (diagonal
    # blocks carried weight 0.5) -> overall 8; mean over the ORIGINAL n^2.
    return 8.0 * jnp.sum(partials) / jnp.float32(n * n)
    # TODO(synk): the diagonal block still computes both triangles of its own
    # (t,t) tile; exploiting within-block symmetry would shave a further
    # ~t/(2*n) of the work for large nb.


def _reference_loss(x, z):
    """Pure-JAX reference matching the PyTorch module."""
    def pdist_sq(a):
        d = a[:, None, :] - a[None, :, :]
        return jnp.sum(d * d, axis=-1)
    dist_x = pdist_sq(x.astype(jnp.float32))
    dist_z = pdist_sq(z.astype(jnp.float32))
    return jnp.mean((dist_x - dist_z) ** 2)


if __name__ == "__main__":
    key = jax.random.PRNGKey(0)

    # (n_samples, F_orig, F_proj, tile): cover single-block (nb=1, padded),
    # two-block (both chunks + a dummy step), odd triangle (nb=3), and a
    # padded multi-block case (validity masks + symmetry together).
    cases = [
        (8, 32, 16, 512),
        (256, 32, 16, 128),
        (384, 32, 16, 128),
        (300, 32, 16, 128),
    ]
    for idx, (n, fx, fz, tile) in enumerate(cases):
        kx, kz = jax.random.split(jax.random.fold_in(key, idx))
        X = jax.random.normal(kx, (n, fx), dtype=jnp.float32)
        Z = jax.random.normal(kz, (n, fz), dtype=jnp.float32)
        ref = _reference_loss(X, Z)

        # Fast path: bf16 single-pass MXU Gram (norm/diff math stays in f32).
        loss = local_relation_loss(X, Z, tile=tile)
        jax.block_until_ready(loss)
        assert jnp.allclose(loss, ref, rtol=2e-3, atol=1e-3), (
            "bf16", n, float(loss), float(ref))

        # Deliberate high-precision path: f32 Gram with precision=HIGHEST.
        loss_hp = local_relation_loss(X, Z, tile=tile, gram_dtype=jnp.float32)
        jax.block_until_ready(loss_hp)
        assert jnp.allclose(loss_hp, ref, rtol=1e-4, atol=1e-4), (
            "f32", n, float(loss_hp), float(ref))

    print("KERNEL_OK")
</pallas_src>

<mosaic_0001>
module attributes {stable_mosaic.version = 11 : i64} {
  func.func @kernel(%arg0: i32, %arg1: i32, %arg2: memref<1x1xi32, #tpu.memory_space<smem>>, %arg3: memref<1x1xi32, #tpu.memory_space<smem>>, %arg4: memref<1x1xi32, #tpu.memory_space<smem>>, %arg5: memref<128x48xbf16, #tpu.memory_space<vmem>>, %arg6: memref<48x128xbf16, #tpu.memory_space<vmem>>, %arg7: memref<128x1xf32, #tpu.memory_space<vmem>>, %arg8: memref<1x128xf32, #tpu.memory_space<vmem>>, %arg9: memref<1x128xf32, #tpu.memory_space<vmem>>, %arg10: memref<128x1xf32, #tpu.memory_space<vmem>>, %arg11: memref<1x8x128xf32, #tpu.memory_space<vmem>>, %arg12: memref<128x128xf32, #tpu.memory_space<vmem>>) attributes {dimension_semantics = [#tpu.dimension_semantics<parallel>, #tpu.dimension_semantics<arbitrary>], iteration_bounds = array<i64: 1, 1>, scalar_prefetch = 3 : i64, scratch_operands = 1 : i64, tpu.core_type = #tpu.core_type<tc>, window_params = [{transform_indices = @transform_0, window_bounds = array<i64: 128, 48>}, {transform_indices = @transform_1, window_bounds = array<i64: 48, 128>}, {transform_indices = @transform_2, window_bounds = array<i64: 128, 1>}, {transform_indices = @transform_3, window_bounds = array<i64: 1, 128>}, {transform_indices = @transform_4, window_bounds = array<i64: 1, 128>}, {transform_indices = @transform_5, window_bounds = array<i64: 128, 1>}, {transform_indices = @transform_6, window_bounds = array<i64: 1, 8, 128>}]} {
    %0 = arith.index_cast %arg0 : i32 to index
    %1 = arith.index_cast %arg1 : i32 to index
    %2 = memref.load %arg2[%0, %1] : memref<1x1xi32, #tpu.memory_space<smem>>
    %3 = arith.index_cast %arg0 : i32 to index
    %4 = arith.index_cast %arg1 : i32 to index
    %5 = memref.load %arg3[%3, %4] : memref<1x1xi32, #tpu.memory_space<smem>>
    %6 = arith.index_cast %arg0 : i32 to index
    %7 = arith.index_cast %arg1 : i32 to index
    %8 = memref.load %arg4[%6, %7] : memref<1x1xi32, #tpu.memory_space<smem>>
    %c1_i32 = arith.constant 1 : i32
    %9 = arith.cmpi eq, %8, %c1_i32 : i32
    %10 = arith.extui %9 : i1 to i32
    %c0_i32 = arith.constant 0 : i32
    %11 = arith.cmpi ne, %10, %c0_i32 : i32
    scf.if %11 {
      %c0 = arith.constant 0 : index
      %c0_0 = arith.constant 0 : index
      %12 = vector.load %arg5[%c0, %c0_0] : memref<128x48xbf16, #tpu.memory_space<vmem>>, vector<128x48xbf16>
      %c0_1 = arith.constant 0 : index
      %c0_2 = arith.constant 0 : index
      %13 = vector.load %arg6[%c0_1, %c0_2] : memref<48x128xbf16, #tpu.memory_space<vmem>>, vector<48x128xbf16>
      %cst = arith.constant dense<0.000000e+00> : vector<128x128xf32>
      %14 = tpu.matmul %12, %13, %cst {dimension_numbers = #tpu.dot_dimension_numbers<[1], [0], [0], [1], [0, 0, 1, 1], [], []>} : vector<128x48xbf16>, vector<48x128xbf16>, vector<128x128xf32> -> vector<128x128xf32>
      %c0_3 = arith.constant 0 : index
      %c0_4 = arith.constant 0 : index
      %15 = vector.load %arg7[%c0_3, %c0_4] : memref<128x1xf32, #tpu.memory_space<vmem>>, vector<128x1xf32>
      %c0_5 = arith.constant 0 : index
      %c0_6 = arith.constant 0 : index
      %16 = vector.load %arg8[%c0_5, %c0_6] : memref<1x128xf32, #tpu.memory_space<vmem>>, vector<1x128xf32>
      %17 = vector.broadcast %15 : vector<128x1xf32> to vector<128x128xf32>
      %18 = vector.broadcast %16 : vector<1x128xf32> to vector<128x128xf32>
      %19 = arith.addf %17, %18 : vector<128x128xf32>
      %20 = arith.subf %19, %14 : vector<128x128xf32>
      %c0_7 = arith.constant 0 : index
      %c0_8 = arith.constant 0 : index
      %21 = vector.load %arg9[%c0_7, %c0_8] : memref<1x128xf32, #tpu.memory_space<vmem>>, vector<1x128xf32>
      %22 = vector.broadcast %21 : vector<1x128xf32> to vector<128x128xf32>
      %23 = arith.mulf %20, %22 : vector<128x128xf32>
      %24 = arith.mulf %23, %23 : vector<128x128xf32>
      %25 = arith.cmpi eq, %2, %5 : i32
      %26 = arith.extui %25 : i1 to i32
      %c0_i32_9 = arith.constant 0 : i32
      %27 = arith.cmpi ne, %26, %c0_i32_9 : i32
      scf.if %27 {
        %cst_13 = arith.constant 5.000000e-01 : f32
        %34 = vector.broadcast %cst_13 : f32 to vector<128x128xf32>
        %35 = arith.mulf %34, %24 : vector<128x128xf32>
        %c0_14 = arith.constant 0 : index
        %c0_15 = arith.constant 0 : index
        %36 = vector.load %arg12[%c0_14, %c0_15] : memref<128x128xf32, #tpu.memory_space<vmem>>, vector<128x128xf32>
        tpu.vector_store %arg12[%c0_14, %c0_15], %35 {strides = array<i32>} : memref<128x128xf32, #tpu.memory_space<vmem>>, vector<128x128xf32>,
      } else {
      }
      %28 = arith.cmpi ne, %2, %5 : i32
      %29 = arith.extui %28 : i1 to i32
      %c0_i32_10 = arith.constant 0 : i32
      %30 = arith.cmpi ne, %29, %c0_i32_10 : i32
      scf.if %30 {
        %c0_13 = arith.constant 0 : index
        %c0_14 = arith.constant 0 : index
        %34 = vector.load %arg12[%c0_13, %c0_14] : memref<128x128xf32, #tpu.memory_space<vmem>>, vector<128x128xf32>
        %35 = arith.addf %34, %24 : vector<128x128xf32>
        %c0_15 = arith.constant 0 : index
        %c0_16 = arith.constant 0 : index
        %36 = vector.load %arg12[%c0_15, %c0_16] : memref<128x128xf32, #tpu.memory_space<vmem>>, vector<128x128xf32>
        tpu.vector_store %arg12[%c0_15, %c0_16], %35 {strides = array<i32>} : memref<128x128xf32, #tpu.memory_space<vmem>>, vector<128x128xf32>,
      } else {
      }
      %c0_i32_11 = arith.constant 0 : i32
      %31 = arith.cmpi eq, %5, %c0_i32_11 : i32
      %32 = arith.extui %31 : i1 to i32
      %c0_i32_12 = arith.constant 0 : i32
      %33 = arith.cmpi ne, %32, %c0_i32_12 : i32
      scf.if %33 {
        %c0_13 = arith.constant 0 : index
        %c0_14 = arith.constant 0 : index
        %34 = vector.load %arg12[%c0_13, %c0_14] : memref<128x128xf32, #tpu.memory_space<vmem>>, vector<128x128xf32>
        %c0_15 = arith.constant 0 : index
        %c0_16 = arith.constant 0 : index
        %35 = vector.load %arg10[%c0_15, %c0_16] : memref<128x1xf32, #tpu.memory_space<vmem>>, vector<128x1xf32>
        %36 = vector.broadcast %35 : vector<128x1xf32> to vector<128x128xf32>
        %37 = arith.mulf %34, %36 : vector<128x128xf32>
        %38 = vector.shape_cast %37 : vector<128x128xf32> to vector<16x8x128xf32>
        %cst_17 = arith.constant dense<0.000000e+00> : vector<8x128xf32>
        %39 = vector.multi_reduction <add>, %38, %cst_17 [0] : vector<16x8x128xf32> to vector<8x128xf32>
        %40 = vector.shape_cast %39 : vector<8x128xf32> to vector<1x8x128xf32>
        %c0_18 = arith.constant 0 : index
        %c0_19 = arith.constant 0 : index
        %c0_20 = arith.constant 0 : index
        %41 = vector.load %arg11[%c0_18, %c0_19, %c0_20] : memref<1x8x128xf32, #tpu.memory_space<vmem>>, vector<1x8x128xf32>
        tpu.vector_store %arg11[%c0_18, %c0_19, %c0_20], %40 {strides = array<i32>} : memref<1x8x128xf32, #tpu.memory_space<vmem>>, vector<1x8x128xf32>,
      } else {
      }
    } else {
    }
    return
  }
  func.func @transform_0(%arg0: i32, %arg1: i32, %arg2: memref<1x1xi32, #tpu.memory_space<smem>>, %arg3: memref<1x1xi32, #tpu.memory_space<smem>>, %arg4: memref<1x1xi32, #tpu.memory_space<smem>>) -> (i32, i32) {
    %0 = arith.index_cast %arg0 : i32 to index
    %1 = arith.index_cast %arg1 : i32 to index
    %2 = memref.load %arg2[%0, %1] : memref<1x1xi32, #tpu.memory_space<smem>>
    %c0_i32 = arith.constant 0 : i32
    %c0_i32_0 = arith.constant 0 : i32
    return %2, %c0_i32 : i32, i32
  }
  func.func @transform_1(%arg0: i32, %arg1: i32, %arg2: memref<1x1xi32, #tpu.memory_space<smem>>, %arg3: memref<1x1xi32, #tpu.memory_space<smem>>, %arg4: memref<1x1xi32, #tpu.memory_space<smem>>) -> (i32, i32) {
    %0 = arith.index_cast %arg0 : i32 to index
    %1 = arith.index_cast %arg1 : i32 to index
    %2 = memref.load %arg3[%0, %1] : memref<1x1xi32, #tpu.memory_space<smem>>
    %c0_i32 = arith.constant 0 : i32
    %c0_i32_0 = arith.constant 0 : i32
    return %c0_i32, %2 : i32, i32
  }
  func.func @transform_2(%arg0: i32, %arg1: i32, %arg2: memref<1x1xi32, #tpu.memory_space<smem>>, %arg3: memref<1x1xi32, #tpu.memory_space<smem>>, %arg4: memref<1x1xi32, #tpu.memory_space<smem>>) -> (i32, i32) {
    %0 = arith.index_cast %arg0 : i32 to index
    %1 = arith.index_cast %arg1 : i32 to index
    %2 = memref.load %arg2[%0, %1] : memref<1x1xi32, #tpu.memory_space<smem>>
    %c0_i32 = arith.constant 0 : i32
    %c0_i32_0 = arith.constant 0 : i32
    return %2, %c0_i32 : i32, i32
  }
  func.func @transform_3(%arg0: i32, %arg1: i32, %arg2: memref<1x1xi32, #tpu.memory_space<smem>>, %arg3: memref<1x1xi32, #tpu.memory_space<smem>>, %arg4: memref<1x1xi32, #tpu.memory_space<smem>>) -> (i32, i32) {
    %0 = arith.index_cast %arg0 : i32 to index
    %1 = arith.index_cast %arg1 : i32 to index
    %2 = memref.load %arg3[%0, %1] : memref<1x1xi32, #tpu.memory_space<smem>>
    %c0_i32 = arith.constant 0 : i32
    %c0_i32_0 = arith.constant 0 : i32
    return %c0_i32, %2 : i32, i32
  }
  func.func @transform_4(%arg0: i32, %arg1: i32, %arg2: memref<1x1xi32, #tpu.memory_space<smem>>, %arg3: memref<1x1xi32, #tpu.memory_space<smem>>, %arg4: memref<1x1xi32, #tpu.memory_space<smem>>) -> (i32, i32) {
    %0 = arith.index_cast %arg0 : i32 to index
    %1 = arith.index_cast %arg1 : i32 to index
    %2 = memref.load %arg3[%0, %1] : memref<1x1xi32, #tpu.memory_space<smem>>
    %c0_i32 = arith.constant 0 : i32
    %c0_i32_0 = arith.constant 0 : i32
    return %c0_i32, %2 : i32, i32
  }
  func.func @transform_5(%arg0: i32, %arg1: i32, %arg2: memref<1x1xi32, #tpu.memory_space<smem>>, %arg3: memref<1x1xi32, #tpu.memory_space<smem>>, %arg4: memref<1x1xi32, #tpu.memory_space<smem>>) -> (i32, i32) {
    %0 = arith.index_cast %arg0 : i32 to index
    %1 = arith.index_cast %arg1 : i32 to index
    %2 = memref.load %arg2[%0, %1] : memref<1x1xi32, #tpu.memory_space<smem>>
    %c0_i32 = arith.constant 0 : i32
    %c0_i32_0 = arith.constant 0 : i32
    return %2, %c0_i32 : i32, i32
  }
  func.func @transform_6(%arg0: i32, %arg1: i32, %arg2: memref<1x1xi32, #tpu.memory_space<smem>>, %arg3: memref<1x1xi32, #tpu.memory_space<smem>>, %arg4: memref<1x1xi32, #tpu.memory_space<smem>>) -> (i32, i32, i32) {
    %0 = arith.index_cast %arg0 : i32 to index
    %1 = arith.index_cast %arg1 : i32 to index
    %2 = memref.load %arg2[%0, %1] : memref<1x1xi32, #tpu.memory_space<smem>>
    %c0_i32 = arith.constant 0 : i32
    %c0_i32_0 = arith.constant 0 : i32
    %c0_i32_1 = arith.constant 0 : i32
    return %2, %c0_i32, %c0_i32_0 : i32, i32, i32
  }
}

</mosaic_0001>

<bundles_post_ra>
// kernel: tpu_custom_call.1
= control target key start
LH: loop header
LB: loop body
LE: loop exit
PB: predicated region body
PF: predicated region fallthrough
CT: control target
= control target key end

     0   :  { %s1272_s0 = inlined_call_operand.<no memory space> [shape: s32[1,1], index: 0, kind: input, shape index: {}]   ;;  %s1273_s1 = inlined_call_operand.<no memory space> [shape: s32[1,1], index: 1, kind: input, shape index: {}]   ;;  %s1274_s2 = inlined_call_operand.<no memory space> [shape: s32[1,1], index: 2, kind: input, shape index: {}]   ;;  %s1275_s3 = inlined_call_operand.vmem [shape: bf16[128,48], index: 3, kind: input, shape index: {}]   ;;  %s1276_s4 = inlined_call_operand.vmem [shape: bf16[48,128], index: 4, kind: input, shape index: {}]   ;;  %s1277_s5 = inlined_call_operand.vmem [shape: f32[128,1], index: 5, kind: input, shape index: {}]   ;;  %s1278_s6 = inlined_call_operand.vmem [shape: f32[1,128], index: 6, kind: input, shape index: {}]   ;;  %s1279_s7 = inlined_call_operand.vmem [shape: f32[1,128], index: 7, kind: input, shape index: {}]   ;;  %s1280_s8 = inlined_call_operand.vmem [shape: f32[128,1], index: 8, kind: input, shape index: {}]   ;;  %s1281_s9 = inlined_call_operand.hbm [shape: f32[1,8,128], index: 9, kind: output, shape index: {}]  }
   0x1   :  { %14 = sst [smem:[#allocation4]] %s1272_s0 }
   0x2   :  { %17 = vsyncpa [#allocation8], 0  ;;  %s1080_s11 = sld [smem:[#allocation4]]  ;;  %p173_p0 = scmp.lt.s32.totalorder %s1273_s1, 0 }
   0x3   :  { %p917_p2 = scmp.ne.s32.totalorder %s1274_s2, 1 }
   0x4   :  { %s1088_s16 = scalar_select %p173_p0, %s1273_s1, 0 }
   0x6   :  { %s912_s17 = sshll.u32 %s1088_s16, 2  ;;  %s201_s0 = scalar_lea.vmem %s1278_s6, %s1088_s16 }
   0x7   :  { %s176_s22 = scalar_lea.vmem %s1276_s4, %s912_s17  ;;  %s212_s25 = scalar_lea.vmem %s1279_s7, %s1088_s16 }
   0x8   :  { %s910_s26 = sshll.u32 %s1080_s11, 4  ;;  %p939_p3 = scmp.ne.s32.totalorder (!%p917_p2), %s1080_s11, %s1273_s1 }
   0x9   :  { %p160_p1 = scmp.lt.s32.totalorder %s910_s26, 15 }
   0xa   :  { %245 = sbr.rel (%p917_p2) target bundleno = 438 (0x1b6), region = 29 }
   0xb   :  { %s1283_s26 = smov (!%p160_p1, %s910_s26), 15 }
   0xc   :  { %s911_s27 = sshll.u32 %s1283_s26, 2  ;;  %s914_s28 = sshll.u32 %s1283_s26, 3 }
   0xd   :  { %s1106_s10 = scalar_lea.vmem %s1275_s3, %s911_s27  ;;  %s1111_s14 = scalar_lea.vmem %s1277_s5, %s914_s28 }
   0xe   :  { %s1116_s17 = scalar_lea.vmem %s1280_s8, %s914_s28 }
   0xf   :  { %v987_v0 = vld [vmem:[%s176_s22 + $0x10] sm:$0xff]   ;;  %v988_v1 = vld [vmem:[%s176_s22 + $0x8] sm:$0xff]   ;;  %vm326_vm0 = vcmask 392192   ;;  %v989_v2 = vld [vmem:[%s176_s22] sm:$0xff]   ;;  %v1024_v5 = vmov 0  }
  0x10   :  { %954 = vmatprep.subr.bf16.mxu0 %v987_v0  ;;  %976 = vmatprep.subr.bf16.mxu1 %v987_v0  ;;  %v990_v3 = vld [vmem:[%s1106_s10] sm:$0xff]   ;;  %v992_v6 = vld [vmem:[%s1106_s10 + $0x8] sm:$0xff]   ;;  %v994_v8 = vld [vmem:[%s1106_s10 + $0x10] sm:$0xff]  }
  0x11   :  { %955 = vmatpush3.bf16.msra.mxu0 %v987_v0  ;;  %979 = vmatpush3.bf16.msra.mxu1 %v987_v0  ;;  %v991_v4 = vld [vmem:[%s1106_s10 + $0x20] sm:$0xff]   ;;  %v993_v7 = vld [vmem:[%s1106_s10 + $0x28] sm:$0xff]   ;;  %v995_v9 = vld [vmem:[%s1106_s10 + $0x30] sm:$0xff]  }
  0x12   :  { %956 = vmatprep.subr.bf16.mxu0 %v988_v1  ;;  %977 = vmatprep.subr.bf16.mxu1 %v988_v1  ;;  %v450_v10 = vld [vmem:[%s1111_s14 + $0x10] sm:$0xff]  ;;  %v448_v11 = vld [vmem:[%s1111_s14] sm:$0xff]  ;;  %v451_v12 = vld [vmem:[%s1111_s14 + $0x18] sm:$0xff] }
  0x13   :  { %960 = vmatprep.mubr.msk.bf16.mxu0 %vm326_vm0, %v990_v3  ;;  %986 = vset.pattern.permute.xlu1 %v1024_v5  ;;  %v449_v13 = vld [vmem:[%s1111_s14 + $0x8] sm:$0xff]  ;;  %v452_v15 = vld [vmem:[%s1111_s14 + $0x20] sm:$0xff]  ;;  %v996_v16 = vld [vmem:[%s1106_s10 + $0x18] sm:$0xff]  }
  0x14   :  { %968 = vmatprep.mubr.msk.bf16.mxu1 %vm326_vm0, %v991_v4  ;;  %985 = vset.pattern.permute.xlu0 %v1024_v5  ;;  %v453_v14 = vld [vmem:[%s1111_s14 + $0x28] sm:$0xff]  ;;  %v997_v17 = vld [vmem:[%s1106_s10 + $0x38] sm:$0xff]   ;;  %v454_v19 = vld [vmem:[%s1111_s14 + $0x30] sm:$0xff] }
  0x15   :  { %957 = vmatpush3.bf16.msra.mxu0 %v988_v1  ;;  %980 = vmatpush3.bf16.msra.mxu1 %v988_v1  ;;  %v455_v18 = vld [vmem:[%s1111_s14 + $0x38] sm:$0xff]  ;;  %v457_v20 = vld [vmem:[%s1111_s14 + $0x48] sm:$0xff]  ;;  %v456_v21 = vld [vmem:[%s1111_s14 + $0x40] sm:$0xff] }
  0x16   :  { %958 = vmatprep.subr.bf16.mxu0 %v989_v2  ;;  %978 = vmatprep.subr.bf16.mxu1 %v989_v2  ;;  %v459_v22 = vld [vmem:[%s1111_s14 + $0x58] sm:$0xff]  ;;  %v458_v23 = vld [vmem:[%s1111_s14 + $0x50] sm:$0xff]  ;;  %v461_v24 = vld [vmem:[%s1111_s14 + $0x68] sm:$0xff] }
  0x17   :  { %477 = vperm.xlu1 %986, %v450_v10   ;;  %467 = vperm.xlu0 %985, %v448_v11   ;;  %v460_v25 = vld [vmem:[%s1111_s14 + $0x60] sm:$0xff]  ;;  %v463_v26 = vld [vmem:[%s1111_s14 + $0x78] sm:$0xff]  ;;  %v462_v27 = vld [vmem:[%s1111_s14 + $0x70] sm:$0xff] }
  0x18   :  { %v937_v40 = vld [vmem:[%s201_s0] ss:$0 sm:$0xff] }
  0x19   :  { %959 = vmatpush3.bf16.msra.mxu0 %v989_v2  ;;  %981 = vmatpush3.bf16.msra.mxu1 %v989_v2  ;;  %v1165_v45 = vld [vmem:[%s212_s25] ss:$0 sm:$0xff] }
  0x1b   :  { %482 = vperm.xlu1 %986, %v451_v12   ;;  %472 = vperm.xlu0 %985, %v449_v13  }
  0x1c   :  { %961 = vmatmul.mubr.msk.bf16.vlgmr.msra.gmra.mxu0 %vm326_vm0, %v992_v6  ;;  %969 = vmatmul.mubr.msk.bf16.vlgmr.msra.gmra.mxu1 %vm326_vm0, %v993_v7 }
  0x1d   :  { %964 = vmatprep.mubr.msk.bf16.mxu0 %vm326_vm0, %v994_v8  ;;  %972 = vmatprep.mubr.msk.bf16.mxu1 %vm326_vm0, %v995_v9 }
  0x1f   :  { %492 = vperm.xlu1 %986, %v453_v14   ;;  %487 = vperm.xlu0 %985, %v452_v15  }
  0x23   :  { %502 = vperm.xlu1 %986, %v455_v18   ;;  %497 = vperm.xlu0 %985, %v454_v19  }
  0x24   :  { %965 = vmatmul.mubr.msk.bf16.gmra.mxu0 %vm326_vm0, %v996_v16  ;;  %973 = vmatmul.mubr.msk.bf16.gmra.mxu1 %vm326_vm0, %v997_v17 }
  0x27   :  { %512 = vperm.xlu1 %986, %v457_v20   ;;  %507 = vperm.xlu0 %985, %v456_v21  }
  0x2b   :  { %522 = vperm.xlu1 %986, %v459_v22   ;;  %517 = vperm.xlu0 %985, %v458_v23  }
  0x2f   :  { %532 = vperm.xlu1 %986, %v461_v24   ;;  %527 = vperm.xlu0 %985, %v460_v25  }
  0x33   :  { %542 = vperm.xlu1 %986, %v463_v26   ;;  %537 = vperm.xlu0 %985, %v462_v27  }
  0x92   :  { %v468_v28 = vpop.permute.xlu0 %467  ;;  %v478_v29 = vpop.permute.xlu1 %477 }
  0x93   :  { %v553_v42 = vadd.f32 %v937_v40, %v478_v29  ;;  %v551_v47 = vadd.f32 %v937_v40, %v468_v28 }
  0x96   :  { %v473_v30 = vpop.permute.xlu0 %472  ;;  %v483_v31 = vpop.permute.xlu1 %482 }
  0x97   :  { %v554_v59 = vadd.f32 %v937_v40, %v483_v31  ;;  %v552_v60 = vadd.f32 %v937_v40, %v473_v30 }
  0x9a   :  { %v488_v32 = vpop.permute.xlu0 %487  ;;  %v1153_v33 = vpop.permute.xlu1 %492 }
  0x9b   :  { %v555_v16 = vadd.f32 %v937_v40, %v488_v32 }
  0x9e   :  { %v498_v34 = vpop.permute.xlu0 %497  ;;  %v503_v35 = vpop.permute.xlu1 %502 }
  0x9f   :  { %v557_v5 = vadd.f32 %v937_v40, %v498_v34  ;;  %v558_v17 = vadd.f32 %v937_v40, %v503_v35 }
  0xa2   :  { %v508_v36 = vpop.permute.xlu0 %507  ;;  %v513_v37 = vpop.permute.xlu1 %512 }
  0xa3   :  { %v559_v48 = vadd.f32 %v937_v40, %v508_v36  ;;  %v560_v61 = vadd.f32 %v937_v40, %v513_v37  ;;  %v556_v37 = vadd.f32 %v937_v40, %v1153_v33 }
  0xa6   :  { %v518_v38 = vpop.permute.xlu0 %517  ;;  %v523_v39 = vpop.permute.xlu1 %522 }
  0xa7   :  { %v561_v43 = vadd.f32 %v937_v40, %v518_v38  ;;  %v562_v62 = vadd.f32 %v937_v40, %v523_v39 }
  0xaa   :  { %v528_v41 = vpop.permute.xlu0 %527  ;;  %v533_v49 = vpop.permute.xlu1 %532 }
  0xab   :  { %v563_v26 = vadd.f32 %v937_v40, %v528_v41  ;;  %v564_v38 = vadd.f32 %v937_v40, %v533_v49 }
  0xae   :  { %v538_v54 = vpop.permute.xlu0 %537  ;;  %v543_v11 = vpop.permute.xlu1 %542 }
  0xaf   :  { %v565_v6 = vadd.f32 %v937_v40, %v538_v54  ;;  %v566_v27 = vadd.f32 %v937_v40, %v543_v11 }
  0xdc   :  { %v962_v44 = vpop.f32.mrf.mxu0  ;;  %v970_v46 = vpop.f32.mrf.mxu1 }
  0xdd   :  { %v569_v50 = vsub.f32 %v553_v42, %v962_v44  ;;  %v577_v51 = vsub.f32 %v561_v43, %v970_v46 }
  0xde   :  { %v385_v52 = vpop.f32.mrf.mxu0  ;;  %v417_v53 = vpop.f32.mrf.mxu1 }
  0xdf   :  { %v592_v55 = vmul.f32 %v1165_v45, %v569_v50  ;;  %v600_v56 = vmul.f32 %v1165_v45, %v577_v51  ;;  %v567_v57 = vsub.f32 %v551_v47, %v385_v52  ;;  %v575_v58 = vsub.f32 %v559_v48, %v417_v53 }
  0xe0   :  { %v963_v63 = vpop.f32.mrf.mxu0  ;;  %v971_v0 = vpop.f32.mrf.mxu1 }
  0xe1   :  { %v1169_v1 = vmul.f32 %v592_v55, %v592_v55  ;;  %v1171_v2 = vmul.f32 %v600_v56, %v600_v56  ;;  %v590_v3 = vmul.f32 %v1165_v45, %v567_v57  ;;  %v598_v4 = vmul.f32 %v1165_v45, %v575_v58 }
  0xe2   :  { %v570_v7 = vsub.f32 %v554_v59, %v963_v63  ;;  %v578_v8 = vsub.f32 %v562_v62, %v971_v0  ;;  %v388_v9 = vpop.f32.mrf.mxu0  ;;  %v420_v10 = vpop.f32.mrf.mxu1 }
  0xe3   :  { %v1175_v12 = vmul.f32 %v590_v3, %v590_v3  ;;  %v1177_v13 = vmul.f32 %v598_v4, %v598_v4  ;;  %v568_v14 = vsub.f32 %v552_v60, %v388_v9  ;;  %v576_v15 = vsub.f32 %v560_v61, %v420_v10 }
  0xe4   :  { %v593_v18 = vmul.f32 %v1165_v45, %v570_v7  ;;  %v601_v19 = vmul.f32 %v1165_v45, %v578_v8  ;;  %v966_v20 = vpop.f32.mrf.mxu0  ;;  %v974_v21 = vpop.f32.mrf.mxu1 }
  0xe5   :  { %v591_v22 = vmul.f32 %v1165_v45, %v568_v14  ;;  %v599_v23 = vmul.f32 %v1165_v45, %v576_v15  ;;  %v573_v24 = vsub.f32 %v557_v5, %v966_v20  ;;  %v581_v25 = vsub.f32 %v565_v6, %v974_v21 }
  0xe6   :  { %v1183_v28 = vmul.f32 %v593_v18, %v593_v18  ;;  %v1185_v29 = vmul.f32 %v601_v19, %v601_v19  ;;  %v401_v30 = vpop.f32.mrf.mxu0  ;;  %v433_v31 = vpop.f32.mrf.mxu1 }
  0xe7   :  { %v1187_v32 = vmul.f32 %v591_v22, %v591_v22  ;;  %v1189_v34 = vmul.f32 %v599_v23, %v599_v23  ;;  %v596_v35 = vmul.f32 %v1165_v45, %v573_v24  ;;  %v604_v36 = vmul.f32 %v1165_v45, %v581_v25 }
  0xe8   :  { %v571_v39 = vsub.f32 %v555_v16, %v401_v30  ;;  %v579_v41 = vsub.f32 %v563_v26, %v433_v31  ;;  %v967_v42 = vpop.f32.mrf.mxu0  ;;  %v975_v43 = vpop.f32.mrf.mxu1 }
  0xe9   :  { %v1194_v44 = vmul.f32 %v596_v35, %v596_v35  ;;  %v1196_v46 = vmul.f32 %v604_v36, %v604_v36  ;;  %v574_v47 = vsub.f32 %v558_v17, %v967_v42  ;;  %v582_v48 = vsub.f32 %v566_v27, %v975_v43 }
  0xea   :  { %v594_v50 = vmul.f32 %v1165_v45, %v571_v39  ;;  %v602_v51 = vmul.f32 %v1165_v45, %v579_v41  ;;  %v404_v52 = vpop.f32.mrf.mxu0  ;;  %v436_v53 = vpop.f32.mrf.mxu1 }
  0xeb   :  { %v597_v54 = vmul.f32 %v1165_v45, %v574_v47  ;;  %v605_v33 = vmul.f32 %v1165_v45, %v582_v48  ;;  %v572_v40 = vsub.f32 %v556_v37, %v404_v52  ;;  %v580_v49 = vsub.f32 %v564_v38, %v436_v53  ;;  %625 = sbr.rel (%p939_p3) target bundleno = 250 (0xfa), region = 33 }
  0xec   :  { %v610_v55 = vmul.f32 %v594_v50, %v594_v50  ;;  %v1202_v56 = vmul.f32 %v602_v51, %v602_v51 }
  0xed   :  { %v613_v57 = vmul.f32 %v597_v54, %v597_v54  ;;  %v1204_v58 = vmul.f32 %v605_v33, %v605_v33  ;;  %v595_v59 = vmul.f32 %v1165_v45, %v572_v40  ;;  %v603_v60 = vmul.f32 %v1165_v45, %v580_v49 }
  0xef   :  { %v611_v61 = vmul.f32 %v595_v59, %v595_v59  ;;  %v1208_v62 = vmul.f32 %v603_v60, %v603_v60 }
  0xf0   :  { %v626_v63 = vmul.f32 0.5, %v1175_v12  ;;  %v627_v0 = vmul.f32 0.5, %v1187_v32  ;;  %v628_v3 = vmul.f32 0.5, %v1169_v1  ;;  %v629_v4 = vmul.f32 0.5, %v1183_v28 }
  0xf1   :  { %v630_v5 = vmul.f32 0.5, %v610_v55  ;;  %v631_v6 = vmul.f32 0.5, %v611_v61  ;;  %v632_v45 = vmul.f32 0.5, %v1194_v44  ;;  %v633_v7 = vmul.f32 0.5, %v613_v57 }
  0xf2   :  { %642 = vst [vmem:[#allocation2 + $0x30] sm:$0xff] %v626_v63  ;;  %643 = vst [vmem:[#allocation2] sm:$0xff] %v627_v0  ;;  %v634_v8 = vmul.f32 0.5, %v1177_v13  ;;  %v635_v9 = vmul.f32 0.5, %v1189_v34  ;;  %v636_v10 = vmul.f32 0.5, %v1171_v2  ;;  %v637_v11 = vmul.f32 0.5, %v1185_v29 }
  0xf3   :  { %644 = vst [vmem:[#allocation2 + $0x58] sm:$0xff] %v628_v3  ;;  %645 = vst [vmem:[#allocation2 + $0x18] sm:$0xff] %v629_v4  ;;  %v638_v14 = vmul.f32 0.5, %v1202_v56  ;;  %v639_v15 = vmul.f32 0.5, %v1208_v62  ;;  %v640_v16 = vmul.f32 0.5, %v1196_v46  ;;  %v641_v17 = vmul.f32 0.5, %v1204_v58 }
  0xf4   :  { %646 = vst [vmem:[#allocation2 + $0x50] sm:$0xff] %v630_v5  ;;  %647 = vst [vmem:[#allocation2 + $0x68] sm:$0xff] %v631_v6 }
  0xf5   :  { %648 = vst [vmem:[#allocation2 + $0x8] sm:$0xff] %v632_v45  ;;  %649 = vst [vmem:[#allocation2 + $0x48] sm:$0xff] %v633_v7 }
  0xf6   :  { %650 = vst [vmem:[#allocation2 + $0x40] sm:$0xff] %v634_v8  ;;  %651 = vst [vmem:[#allocation2 + $0x20] sm:$0xff] %v635_v9 }
  0xf7   :  { %652 = vst [vmem:[#allocation2 + $0x10] sm:$0xff] %v636_v10  ;;  %653 = vst [vmem:[#allocation2 + $0x38] sm:$0xff] %v637_v11 }
  0xf8   :  { %654 = vst [vmem:[#allocation2 + $0x60] sm:$0xff] %v638_v14  ;;  %655 = vst [vmem:[#allocation2 + $0x70] sm:$0xff] %v639_v15 }
  0xf9   :  { %656 = vst [vmem:[#allocation2 + $0x78] sm:$0xff] %v640_v16  ;;  %657 = vst [vmem:[#allocation2 + $0x28] sm:$0xff] %v641_v17 }
  0xfa PF:  { %p940_p4 = scmp.eq.s32.totalorder %s1080_s11, %s1273_s1 }
  0xfc   :  { %661 = sbr.rel (%p940_p4) target bundleno = 268 (0x10c), region = 37 }
 0x101   :  { %v662_v18 = vld [vmem:[#allocation2 + $0x30] sm:$0xff]  ;;  %v663_v19 = vld [vmem:[#allocation2] sm:$0xff]  ;;  %v664_v20 = vld [vmem:[#allocation2 + $0x58] sm:$0xff] }
 0x102   :  { %v678_v21 = vadd.f32 %v662_v18, %v1175_v12  ;;  %v679_v22 = vadd.f32 %v663_v19, %v1187_v32  ;;  %v680_v23 = vadd.f32 %v664_v20, %v1169_v1  ;;  %v665_v24 = vld [vmem:[#allocation2 + $0x18] sm:$0xff]  ;;  %v666_v25 = vld [vmem:[#allocation2 + $0x50] sm:$0xff]  ;;  %v667_v26 = vld [vmem:[#allocation2 + $0x68] sm:$0xff] }
 0x103   :  { %v681_v27 = vadd.f32 %v665_v24, %v1183_v28  ;;  %v682_v30 = vadd.f32 %v666_v25, %v610_v55  ;;  %v683_v31 = vadd.f32 %v667_v26, %v611_v61  ;;  %v668_v35 = vld [vmem:[#allocation2 + $0x8] sm:$0xff]  ;;  %v670_v37 = vld [vmem:[#allocation2 + $0x40] sm:$0xff]  ;;  %v672_v1 = vld [vmem:[#allocation2 + $0x10] sm:$0xff] }
 0x104   :  { %v669_v36 = vld [vmem:[#allocation2 + $0x48] sm:$0xff]  ;;  %694 = vst [vmem:[#allocation2 + $0x30] sm:$0xff] %v678_v21  ;;  %695 = vst [vmem:[#allocation2] sm:$0xff] %v679_v22  ;;  %v684_v38 = vadd.f32 %v668_v35, %v1194_v44  ;;  %v686_v32 = vadd.f32 %v670_v37, %v1177_v13  ;;  %v671_v39 = vld [vmem:[#allocation2 + $0x20] sm:$0xff]  ;;  %v688_v42 = vadd.f32 %v672_v1, %v1171_v2 }
 0x105   :  { %696 = vst [vmem:[#allocation2 + $0x58] sm:$0xff] %v680_v23  ;;  %v685_v12 = vadd.f32 %v669_v36, %v613_v57  ;;  %v673_v41 = vld [vmem:[#allocation2 + $0x38] sm:$0xff]  ;;  %697 = vst [vmem:[#allocation2 + $0x18] sm:$0xff] %v681_v27  ;;  %v687_v28 = vadd.f32 %v671_v39, %v1189_v34  ;;  %v674_v47 = vld [vmem:[#allocation2 + $0x60] sm:$0xff] }
 0x106   :  { %698 = vst [vmem:[#allocation2 + $0x50] sm:$0xff] %v682_v30  ;;  %699 = vst [vmem:[#allocation2 + $0x68] sm:$0xff] %v683_v31  ;;  %v689_v43 = vadd.f32 %v673_v41, %v1185_v29  ;;  %v675_v48 = vld [vmem:[#allocation2 + $0x70] sm:$0xff]  ;;  %v676_v50 = vld [vmem:[#allocation2 + $0x78] sm:$0xff]  ;;  %v690_v13 = vadd.f32 %v674_v47, %v1202_v56 }
 0x107   :  { %700 = vst [vmem:[#allocation2 + $0x8] sm:$0xff] %v684_v38  ;;  %701 = vst [vmem:[#allocation2 + $0x48] sm:$0xff] %v685_v12  ;;  %v691_v44 = vadd.f32 %v675_v48, %v1208_v62  ;;  %v692_v51 = vadd.f32 %v676_v50, %v1196_v46  ;;  %v677_v52 = vld [vmem:[#allocation2 + $0x28] sm:$0xff] }
 0x108   :  { %702 = vst [vmem:[#allocation2 + $0x40] sm:$0xff] %v686_v32  ;;  %703 = vst [vmem:[#allocation2 + $0x20] sm:$0xff] %v687_v28  ;;  %v693_v2 = vadd.f32 %v677_v52, %v1204_v58 }
 0x109   :  { %704 = vst [vmem:[#allocation2 + $0x10] sm:$0xff] %v688_v42  ;;  %705 = vst [vmem:[#allocation2 + $0x38] sm:$0xff] %v689_v43 }
 0x10a   :  { %706 = vst [vmem:[#allocation2 + $0x60] sm:$0xff] %v690_v13  ;;  %707 = vst [vmem:[#allocation2 + $0x70] sm:$0xff] %v691_v44 }
 0x10b   :  { %708 = vst [vmem:[#allocation2 + $0x78] sm:$0xff] %v692_v51  ;;  %709 = vst [vmem:[#allocation2 + $0x28] sm:$0xff] %v693_v2 }
 0x10c PF:  { %p941_p5 = scmp.ne.s32.totalorder %s1273_s1, 0 }
 0x10e   :  { %713 = sbr.rel (%p941_p5) target bundleno = 438 (0x1b6), region = 41 }
 0x113   :  { %v732_v29 = vld [vmem:[%s1116_s17 + $0x10] sm:$0xff]  ;;  %v730_v34 = vld [vmem:[%s1116_s17] sm:$0xff]  ;;  %v1025_v46 = vmov 0   ;;  %v733_v53 = vld [vmem:[%s1116_s17 + $0x18] sm:$0xff] }
 0x114   :  { %999 = vset.pattern.permute.xlu1 %v1025_v46  ;;  %998 = vset.pattern.permute.xlu0 %v1025_v46  ;;  %v731_v54 = vld [vmem:[%s1116_s17 + $0x8] sm:$0xff]  ;;  %v734_v40 = vld [vmem:[%s1116_s17 + $0x20] sm:$0xff]  ;;  %v737_v49 = vld [vmem:[%s1116_s17 + $0x38] sm:$0xff] }
 0x115   :  { %758 = vperm.xlu1 %999, %v732_v29   ;;  %748 = vperm.xlu0 %998, %v730_v34   ;;  %v735_v33 = vld [vmem:[%s1116_s17 + $0x28] sm:$0xff]  ;;  %v736_v55 = vld [vmem:[%s1116_s17 + $0x30] sm:$0xff]  ;;  %v738_v57 = vld [vmem:[%s1116_s17 + $0x40] sm:$0xff] }
 0x116   :  { %v739_v56 = vld [vmem:[%s1116_s17 + $0x48] sm:$0xff]  ;;  %v741_v58 = vld [vmem:[%s1116_s17 + $0x58] sm:$0xff]  ;;  %v740_v59 = vld [vmem:[%s1116_s17 + $0x50] sm:$0xff] }
 0x117   :  { %v743_v60 = vld [vmem:[%s1116_s17 + $0x68] sm:$0xff]  ;;  %v742_v61 = vld [vmem:[%s1116_s17 + $0x60] sm:$0xff]  ;;  %v745_v62 = vld [vmem:[%s1116_s17 + $0x78] sm:$0xff] }
 0x118   :  { %v744_v63 = vld [vmem:[%s1116_s17 + $0x70] sm:$0xff]  ;;  %v715_v5 = vld [vmem:[#allocation2] sm:$0xff]  ;;  %v716_v6 = vld [vmem:[#allocation2 + $0x58] sm:$0xff] }
 0x119   :  { %763 = vperm.xlu1 %999, %v733_v53   ;;  %753 = vperm.xlu0 %998, %v731_v54   ;;  %v714_v4 = vld [vmem:[#allocation2 + $0x30] sm:$0xff]  ;;  %v717_v10 = vld [vmem:[#allocation2 + $0x18] sm:$0xff]  ;;  %v719_v20 = vld [vmem:[#allocation2 + $0x68] sm:$0xff] }
 0x11a   :  { %v718_v17 = vld [vmem:[#allocation2 + $0x50] sm:$0xff]  ;;  %v720_v25 = vld [vmem:[#allocation2 + $0x8] sm:$0xff]  ;;  %v722_v38 = vld [vmem:[#allocation2 + $0x40] sm:$0xff] }
 0x11b   :  { %v721_v30 = vld [vmem:[#allocation2 + $0x48] sm:$0xff]  ;;  %v723_v39 = vld [vmem:[#allocation2 + $0x20] sm:$0xff]  ;;  %v724_v43 = vld [vmem:[#allocation2 + $0x10] sm:$0xff] }
 0x11c   :  { %v725_v50 = vld [vmem:[#allocation2 + $0x38] sm:$0xff]  ;;  %v726_v2 = vld [vmem:[#allocation2 + $0x60] sm:$0xff]  ;;  %v727_v46 = vld [vmem:[#allocation2 + $0x70] sm:$0xff] }
 0x11d   :  { %773 = vperm.xlu1 %999, %v735_v33   ;;  %768 = vperm.xlu0 %998, %v734_v40   ;;  %v728_v40 = vld [vmem:[#allocation2 + $0x78] sm:$0xff] }
 0x121   :  { %783 = vperm.xlu1 %999, %v737_v49   ;;  %778 = vperm.xlu0 %998, %v736_v55  }
 0x125   :  { %793 = vperm.xlu1 %999, %v739_v56   ;;  %788 = vperm.xlu0 %998, %v738_v57   ;;  %v729_v57 = vld [vmem:[#allocation2 + $0x28] sm:$0xff] }
 0x129   :  { %803 = vperm.xlu1 %999, %v741_v58   ;;  %798 = vperm.xlu0 %998, %v740_v59  }
 0x12d   :  { %813 = vperm.xlu1 %999, %v743_v60   ;;  %808 = vperm.xlu0 %998, %v742_v61  }
 0x131   :  { %823 = vperm.xlu1 %999, %v745_v62   ;;  %818 = vperm.xlu0 %998, %v744_v63  }
 0x190   :  { %v759_v0 = vpop.permute.xlu1 %758  ;;  %v749_v3 = vpop.permute.xlu0 %748 }
 0x191   :  { %v826_v8 = vmul.f32 %v749_v3, %v714_v4  ;;  %v828_v11 = vmul.f32 %v759_v0, %v716_v6 }
 0x194   :  { %v764_v45 = vpop.permute.xlu1 %763  ;;  %v754_v7 = vpop.permute.xlu0 %753 }
 0x195   :  { %v827_v9 = vmul.f32 %v754_v7, %v715_v5  ;;  %v829_v18 = vmul.f32 %v764_v45, %v717_v10 }
 0x197   :  { %v842_v14 = vadd.f32 %v827_v9, %v826_v8 }
 0x198   :  { %v774_v15 = vpop.permute.xlu1 %773  ;;  %v769_v16 = vpop.permute.xlu0 %768 }
 0x199   :  { %v843_v19 = vadd.f32 %v842_v14, %v828_v11  ;;  %v830_v21 = vmul.f32 %v769_v16, %v718_v17  ;;  %v831_v26 = vmul.f32 %v774_v15, %v719_v20 }
 0x19b   :  { %v844_v22 = vadd.f32 %v843_v19, %v829_v18 }
 0x19c   :  { %v784_v23 = vpop.permute.xlu1 %783  ;;  %v779_v24 = vpop.permute.xlu0 %778 }
 0x19d   :  { %v845_v27 = vadd.f32 %v844_v22, %v830_v21  ;;  %v832_v31 = vmul.f32 %v779_v24, %v720_v25  ;;  %v833_v12 = vmul.f32 %v784_v23, %v721_v30 }
 0x19f   :  { %v846_v35 = vadd.f32 %v845_v27, %v831_v26 }
 0x1a0   :  { %v794_v36 = vpop.permute.xlu1 %793  ;;  %v789_v37 = vpop.permute.xlu0 %788 }
 0x1a1   :  { %v847_v32 = vadd.f32 %v846_v35, %v832_v31  ;;  %v834_v1 = vmul.f32 %v789_v37, %v722_v38  ;;  %v835_v47 = vmul.f32 %v794_v36, %v723_v39 }
 0x1a3   :  { %v848_v41 = vadd.f32 %v847_v32, %v833_v12 }
 0x1a4   :  { %v804_v28 = vpop.permute.xlu1 %803  ;;  %v799_v42 = vpop.permute.xlu0 %798 }
 0x1a5   :  { %v849_v48 = vadd.f32 %v848_v41, %v834_v1  ;;  %v836_v13 = vmul.f32 %v799_v42, %v724_v43  ;;  %v837_v29 = vmul.f32 %v804_v28, %v725_v50 }
 0x1a7   :  { %v850_v44 = vadd.f32 %v849_v48, %v835_v47 }
 0x1a8   :  { %v814_v51 = vpop.permute.xlu1 %813  ;;  %v809_v52 = vpop.permute.xlu0 %808 }
 0x1a9   :  { %v851_v34 = vadd.f32 %v850_v44, %v836_v13  ;;  %v838_v53 = vmul.f32 %v809_v52, %v726_v2  ;;  %v839_v49 = vmul.f32 %v814_v51, %v727_v46 }
 0x1ab   :  { %v852_v54 = vadd.f32 %v851_v34, %v837_v29 }
 0x1ac   :  { %v819_v33 = vpop.permute.xlu0 %818  ;;  %v824_v56 = vpop.permute.xlu1 %823 }
 0x1ad   :  { %v853_v55 = vadd.f32 %v852_v54, %v838_v53  ;;  %v840_v58 = vmul.f32 %v819_v33, %v728_v40  ;;  %v841_v60 = vmul.f32 %v824_v56, %v729_v57 }
 0x1af   :  { %v854_v59 = vadd.f32 %v853_v55, %v839_v49 }
 0x1b1   :  { %v855_v61 = vadd.f32 %v854_v59, %v840_v58 }
 0x1b3   :  { %v856_v62 = vadd.f32 %v855_v61, %v841_v60 }
 0x1b5   :  { %857 = vst [vmem:[#allocation7] sm:$0xff] %v856_v62 }
 0x1b6 PF:  { %s863_s1 = sld [smem:[#allocation4]]  ;;  %s1026_s21 = smov [#allocation7]  }
 0x1b7   :  { %s870_s22 = sshll.u32 %s1026_s21, 4  ;;  %s871_s22 = int_to_ptr.vmem [resolvable:$true] %s870_s22 }
 0x1b8   :  { %s1000_s27 = scalar_lea.vmem %s871_s22, 128  ;;  %p1005_p7 = scmp.lt.s32.totalorder %s871_s22, %s871_s22 }
 0x1b9   :  { %p1001_p6 = scmp.ne.s32.totalorder %s871_s22, %s1000_s27  ;;  %p1006_p8 = scmp.lt.s32.totalorder %s1000_s27, %s1000_s27 }
 0x1bb   :  { %p1007_p9 = por %p1006_p8, %p1005_p7 }
 0x1bc   :  { %s942_s23 = sshll.u32 %s863_s1, 7 }
 0x1bd   :  { %s868_s26 = scalar_lea.hbm %s1281_s9, %s942_s23  ;;  %p1008_p10 = pnand %p1007_p9, %p1001_p6 }
 0x1bf   :  { %1011 = shalt.err (!%p1008_p10)
}
 0x1c0   :  { %s1012_s28 = scalar_lea.hbm %s868_s26, 128  ;;  %s1014_s10 = scalar_lea.hbm %s1281_s9, 128 }
 0x1c1   :  { %p1013_p11 = scmp.ne.s32.totalorder %s868_s26, %s1012_s28  ;;  %p1015_p12 = scmp.lt.s32.totalorder %s868_s26, %s1281_s9 }
 0x1c2   :  { %p1016_p13 = scmp.lt.s32.totalorder %s1014_s10, %s1012_s28 }
 0x1c4   :  { %p1017_p0 = por %p1016_p13, %p1015_p12 }
 0x1c6   :  { %p1018_p1 = pnand %p1017_p0, %p1013_p11 }
 0x1c8   :  { %1021 = shalt.err (!%p1018_p1)
}
 0x1c9   :  { %873 = dma.vmem_to_hbm [thread:$0]  %s871_s22, 128, %s868_s26, [#allocation8]  }
 0x1ca   :  { %1022 = dma.done.wait [#allocation8], 128  }
 0x1cb   :  { %1023 = vsyncadd [#allocation8], 4294967168 }
 0x1cc   :  { %877 = vsyncpa [#allocation8], 1 }

</bundles_post_ra>
